<compile_context>
chip_gen: v6e
topology: v6e:2x2x1
jax: 0.10.0
libtpu: 0.0.40
codegen_flags: <defaults>
</compile_context>

<pallas_src>
import jax
import jax.numpy as jnp
from jax.experimental import pallas as pl
from jax.experimental.pallas import tpu as pltpu


def _round_up(x, m):
    return (x + m - 1) // m * m


def _encoder_kernel(x_ref, w1_ref, b1_ref, w2_ref, b2_ref, w3_ref, b3_ref,
                    out_ref, acc_ref):
    k = pl.program_id(1)

    # fc1 partial product: (TB, TK)bf16 @ (TK, H)bf16 -> f32 partial.
    partial = jnp.dot(x_ref[...].astype(jnp.bfloat16), w1_ref[...],
                      preferred_element_type=jnp.float32)

    @pl.when(k == 0)
    def _():
        acc_ref[...] = partial          # assign on first step: no zero-fill + RMW

    @pl.when(k > 0)
    def _():
        acc_ref[...] += partial

    @pl.when(k == pl.num_programs(1) - 1)
    def _():
        # TODO(synk): torch Dropout(p=0.1) is identity in eval/inference mode; training-mode
        #             stochastic masking (pltpu.prng_random_bits) intentionally not applied.
        h1 = jnp.maximum(acc_ref[...] + b1_ref[...], 0.0)

        # fc2: (TB, H) @ (H, H) + (1, H), ReLU
        h2 = jnp.dot(h1.astype(jnp.bfloat16), w2_ref[...],
                     preferred_element_type=jnp.float32) + b2_ref[...]
        h2 = jnp.maximum(h2, 0.0)

        # Fused heads: one (H, 2H) matmul -> lane-dense (TB, 2H) output = [mu | log_sigma_sq]
        out = jnp.dot(h2.astype(jnp.bfloat16), w3_ref[...],
                      preferred_element_type=jnp.float32) + b3_ref[...]
        out_ref[...] = out.astype(out_ref.dtype)


def inference_encoder(x, params, *, tb=None, tk=None, w1_buffers=2,
                      vmem_budget_bytes=48 * 1024 * 1024):
    """x: (B, V) float32. params: dict of f32 (in,out) weights and (1,out) biases.

    vmem_budget_bytes defaults to 48 MiB (safe on v7x's 64 MiB physical VMEM);
    raise it to ~96 MiB on v5e/v6e (128 MiB physical) for larger streamed tiles.
    """
    B, V = x.shape
    H = params["w1"].shape[1]

    # --- tile selection ----------------------------------------------------
    # Batch tile: >= 512 rows per streamed w1 block puts fc1 past the HBM breakeven on
    # v5e/v7x (~240-310 flop/B); on v6e go even larger via the tb kwarg if B allows.
    if tb is None:
        tb = 512
    if tk is None:
        tk = 1024                      # fc1 contraction tile, multiple of 256 for v6e/v7x MXU
    tb = max(8, _round_up(min(tb, _round_up(B, 8)), 8))
    tk = max(128, _round_up(min(tk, _round_up(V, 128)), 128))

    def footprint(tb_, tk_):
        return (2 * tb_ * tk_ * 4                      # x tile (f32, double-buffered)
                + w1_buffers * tk_ * H * 2             # streamed w1 (bf16)
                + H * 4 + H * H * 2                    # b1 + w2 (single-buffered residents)
                + H * 4 + H * 2 * H * 2 + 2 * H * 4    # b2 + fused w3 + fused b3
                + 2 * tb_ * 2 * H * 4                  # out tile (f32, double-buffered)
                + tb_ * H * 4)                         # fc1 f32 accumulator scratch

    # Shrink streamed dims until the real footprint fits the cross-generation budget.
    while footprint(tb, tk) > vmem_budget_bytes and tk > 256:
        tk = max(128, _round_up(tk // 2, 128))
    while footprint(tb, tk) > vmem_budget_bytes and tb > 256:
        tb = max(8, _round_up(tb // 2, 8))

    Bp, Vp = _round_up(B, tb), _round_up(V, tk)
    xp = x if (Bp, Vp) == (B, V) else jnp.pad(x, ((0, Bp - B), (0, Vp - V)))

    # bf16 weights: MXU-native operands, half the HBM->VMEM weight traffic.
    # TODO(synk): further w1 compression (int8 on v5e/v6e, fp8-e4m3 on v7x) with per-column
    #             scales folded into the f32 epilogue would halve w1 HBM bytes again.
    w1 = params["w1"]
    if Vp != V:
        w1 = jnp.pad(w1, ((0, Vp - V), (0, 0)))
    w1 = w1.astype(jnp.bfloat16)
    w2 = params["w2"].astype(jnp.bfloat16)
    w3 = jnp.concatenate([params["w31"], params["w32"]], axis=1).astype(jnp.bfloat16)
    b1, b2 = params["b1"], params["b2"]
    b3 = jnp.concatenate([params["b31"], params["b32"]], axis=1)

    grid = (Bp // tb, Vp // tk)  # (batch tiles "parallel", fc1 reduction "arbitrary")
    num_batch_tiles = Bp // tb

    flops = 2 * Bp * (Vp * H + H * H + H * 2 * H)
    bytes_accessed = (xp.size * 4
                      + num_batch_tiles * w1.size * 2      # w1 re-streamed per batch tile
                      + (w2.size + w3.size) * 2
                      + (b1.size + b2.size + b3.size) * 4
                      + Bp * 2 * H * 4)

    vmem_limit = max(32 * 1024 * 1024,
                     int(footprint(tb, tk) * 1.25) + (4 << 20))

    resident = pl.Buffered(1)  # constant-index blocks: fetched once, single buffer

    out = pl.pallas_call(
        _encoder_kernel,
        out_shape=jax.ShapeDtypeStruct((Bp, 2 * H), jnp.float32),
        grid=grid,
        in_specs=[
            pl.BlockSpec((tb, tk), lambda i, k: (i, k)),                          # x tile
            pl.BlockSpec((tk, H), lambda i, k: (k, 0),
                         pipeline_mode=pl.Buffered(w1_buffers)),                  # w1 streamed along V
            pl.BlockSpec((1, H), lambda i, k: (0, 0), pipeline_mode=resident),    # b1
            pl.BlockSpec((H, H), lambda i, k: (0, 0), pipeline_mode=resident),    # w2
            pl.BlockSpec((1, H), lambda i, k: (0, 0), pipeline_mode=resident),    # b2
            pl.BlockSpec((H, 2 * H), lambda i, k: (0, 0), pipeline_mode=resident),  # fused w31|w32
            pl.BlockSpec((1, 2 * H), lambda i, k: (0, 0), pipeline_mode=resident),  # fused b31|b32
        ],
        out_specs=pl.BlockSpec((tb, 2 * H), lambda i, k: (i, 0)),
        scratch_shapes=[pltpu.VMEM((tb, H), jnp.float32)],   # fc1 f32 accumulator
        compiler_params=pltpu.CompilerParams(
            dimension_semantics=("parallel", "arbitrary"),
            vmem_limit_bytes=vmem_limit,
        ),
        cost_estimate=pl.CostEstimate(flops=flops, transcendentals=0,
                                      bytes_accessed=bytes_accessed),
    )(xp, w1, b1, w2, b2, w3, b3)

    mu = out[:B, :H]
    log_sigma_sq = out[:B, H:]
    return mu, log_sigma_sq


def init_params(key, vocab_size, hidden_size):
    """Deterministic init mirroring torch.nn.Linear's U(-1/sqrt(fan_in), 1/sqrt(fan_in)).
    Weights are stored as (in, out) = transpose of PyTorch's (out, in)."""
    ks = jax.random.split(key, 8)

    def linear(kw, kb, fan_in, fan_out):
        bound = 1.0 / jnp.sqrt(jnp.float32(fan_in))
        w = jax.random.uniform(kw, (fan_in, fan_out), jnp.float32, -bound, bound)
        b = jax.random.uniform(kb, (1, fan_out), jnp.float32, -bound, bound)
        return w, b

    w1, b1 = linear(ks[0], ks[1], vocab_size, hidden_size)
    w2, b2 = linear(ks[2], ks[3], hidden_size, hidden_size)
    w31, b31 = linear(ks[4], ks[5], hidden_size, hidden_size)
    w32, b32 = linear(ks[6], ks[7], hidden_size, hidden_size)
    return dict(w1=w1, b1=b1, w2=w2, b2=b2, w31=w31, b31=b31, w32=w32, b32=b32)


def reference_forward(x, params):
    """Pure-JAX reference mirroring the kernel's bf16-operand / f32-accumulate matmuls."""
    bf = jnp.bfloat16

    def lin(a, w, b):
        return jnp.dot(a.astype(bf), w.astype(bf),
                       preferred_element_type=jnp.float32) + b

    h1 = jnp.maximum(lin(x, params["w1"], params["b1"]), 0.0)
    h2 = jnp.maximum(lin(h1, params["w2"], params["b2"]), 0.0)
    mu = lin(h2, params["w31"], params["b31"])
    ls = lin(h2, params["w32"], params["b32"])
    return mu, ls


if __name__ == "__main__":
    B, VOCAB, HIDDEN = 16, 512, 128

    key = jax.random.PRNGKey(0)
    k_x, k_p = jax.random.split(key)

    x = jax.random.normal(k_x, (B, VOCAB), dtype=jnp.float32)
    params = init_params(k_p, VOCAB, HIDDEN)
    mu_ref, ls_ref = reference_forward(x, params)

    # Path 1: small tiles to exercise the multi-step (batch x reduction) grid.
    # (Not representative for benchmarking -- real runs should use the large defaults.)
    mu, log_sigma_sq = inference_encoder(x, params, tb=8, tk=128)
    jax.block_until_ready((mu, log_sigma_sq))
    assert mu.shape == (B, HIDDEN) and log_sigma_sq.shape == (B, HIDDEN)
    assert jnp.allclose(mu, mu_ref, atol=5e-3, rtol=5e-3)
    assert jnp.allclose(log_sigma_sq, ls_ref, atol=5e-3, rtol=5e-3)

    # Path 2: default (large) tiles -> single-step grid, clamped to this small problem.
    mu2, ls2 = inference_encoder(x, params)
    jax.block_until_ready((mu2, ls2))
    assert jnp.allclose(mu2, mu_ref, atol=5e-3, rtol=5e-3)
    assert jnp.allclose(ls2, ls_ref, atol=5e-3, rtol=5e-3)

    print("KERNEL_OK")
</pallas_src>

<mosaic_0001>
module attributes {stable_mosaic.version = 11 : i64} {
  func.func @_encoder_kernel(%arg0: i32, %arg1: i32, %arg2: memref<8x128xf32, #tpu.memory_space<vmem>>, %arg3: memref<128x128xbf16, #tpu.memory_space<vmem>>, %arg4: memref<1x128xf32, #tpu.memory_space<vmem>>, %arg5: memref<128x128xbf16, #tpu.memory_space<vmem>>, %arg6: memref<1x128xf32, #tpu.memory_space<vmem>>, %arg7: memref<128x256xbf16, #tpu.memory_space<vmem>>, %arg8: memref<1x256xf32, #tpu.memory_space<vmem>>, %arg9: memref<8x256xf32, #tpu.memory_space<vmem>>, %arg10: memref<8x128xf32, #tpu.memory_space<vmem>>) attributes {dimension_semantics = [#tpu.dimension_semantics<parallel>, #tpu.dimension_semantics<arbitrary>], iteration_bounds = array<i64: 2, 4>, scalar_prefetch = 0 : i64, scratch_operands = 1 : i64, tpu.core_type = #tpu.core_type<tc>, window_params = [{transform_indices = @transform_0, window_bounds = array<i64: 8, 128>}, {pipeline_mode = #tpu.pipeline_mode<double_buffered>, transform_indices = @transform_1, window_bounds = array<i64: 128, 128>}, {pipeline_mode = #tpu.pipeline_mode<synchronous>, transform_indices = @transform_2, window_bounds = array<i64: 1, 128>}, {pipeline_mode = #tpu.pipeline_mode<synchronous>, transform_indices = @transform_3, window_bounds = array<i64: 128, 128>}, {pipeline_mode = #tpu.pipeline_mode<synchronous>, transform_indices = @transform_4, window_bounds = array<i64: 1, 128>}, {pipeline_mode = #tpu.pipeline_mode<synchronous>, transform_indices = @transform_5, window_bounds = array<i64: 128, 256>}, {pipeline_mode = #tpu.pipeline_mode<synchronous>, transform_indices = @transform_6, window_bounds = array<i64: 1, 256>}, {transform_indices = @transform_7, window_bounds = array<i64: 8, 256>}]} {
    %c0 = arith.constant 0 : index
    %c0_0 = arith.constant 0 : index
    %0 = vector.load %arg2[%c0, %c0_0] : memref<8x128xf32, #tpu.memory_space<vmem>>, vector<8x128xf32>
    %1 = arith.truncf %0 : vector<8x128xf32> to vector<8x128xbf16>
    %c0_1 = arith.constant 0 : index
    %c0_2 = arith.constant 0 : index
    %2 = vector.load %arg3[%c0_1, %c0_2] : memref<128x128xbf16, #tpu.memory_space<vmem>>, vector<128x128xbf16>
    %cst = arith.constant dense<0.000000e+00> : vector<8x128xf32>
    %3 = tpu.matmul %1, %2, %cst {dimension_numbers = #tpu.dot_dimension_numbers<[1], [0], [0], [1], [0, 0, 1, 1], [], []>} : vector<8x128xbf16>, vector<128x128xbf16>, vector<8x128xf32> -> vector<8x128xf32>
    %c0_i32 = arith.constant 0 : i32
    %4 = arith.cmpi eq, %arg1, %c0_i32 : i32
    %5 = arith.extui %4 : i1 to i32
    %c0_i32_3 = arith.constant 0 : i32
    %6 = arith.cmpi ne, %5, %c0_i32_3 : i32
    scf.if %6 {
      %c0_7 = arith.constant 0 : index
      %c0_8 = arith.constant 0 : index
      %13 = vector.load %arg10[%c0_7, %c0_8] : memref<8x128xf32, #tpu.memory_space<vmem>>, vector<8x128xf32>
      tpu.vector_store %arg10[%c0_7, %c0_8], %3 {strides = array<i32>} : memref<8x128xf32, #tpu.memory_space<vmem>>, vector<8x128xf32>,
    } else {
    }
    %c0_i32_4 = arith.constant 0 : i32
    %7 = arith.cmpi sgt, %arg1, %c0_i32_4 : i32
    %8 = arith.extui %7 : i1 to i32
    %c0_i32_5 = arith.constant 0 : i32
    %9 = arith.cmpi ne, %8, %c0_i32_5 : i32
    scf.if %9 {
      %c0_7 = arith.constant 0 : index
      %c0_8 = arith.constant 0 : index
      %13 = vector.load %arg10[%c0_7, %c0_8] : memref<8x128xf32, #tpu.memory_space<vmem>>, vector<8x128xf32>
      %14 = arith.addf %13, %3 : vector<8x128xf32>
      %c0_9 = arith.constant 0 : index
      %c0_10 = arith.constant 0 : index
      %15 = vector.load %arg10[%c0_9, %c0_10] : memref<8x128xf32, #tpu.memory_space<vmem>>, vector<8x128xf32>
      tpu.vector_store %arg10[%c0_9, %c0_10], %14 {strides = array<i32>} : memref<8x128xf32, #tpu.memory_space<vmem>>, vector<8x128xf32>,
    } else {
    }
    %c3_i32 = arith.constant 3 : i32
    %10 = arith.cmpi eq, %arg1, %c3_i32 : i32
    %11 = arith.extui %10 : i1 to i32
    %c0_i32_6 = arith.constant 0 : i32
    %12 = arith.cmpi ne, %11, %c0_i32_6 : i32
    scf.if %12 {
      %c0_7 = arith.constant 0 : index
      %c0_8 = arith.constant 0 : index
      %13 = vector.load %arg10[%c0_7, %c0_8] : memref<8x128xf32, #tpu.memory_space<vmem>>, vector<8x128xf32>
      %c0_9 = arith.constant 0 : index
      %c0_10 = arith.constant 0 : index
      %14 = vector.load %arg4[%c0_9, %c0_10] : memref<1x128xf32, #tpu.memory_space<vmem>>, vector<1x128xf32>
      %15 = vector.broadcast %14 : vector<1x128xf32> to vector<8x128xf32>
      %16 = arith.addf %13, %15 : vector<8x128xf32>
      %cst_11 = arith.constant 0.000000e+00 : f32
      %17 = vector.broadcast %cst_11 : f32 to vector<8x128xf32>
      %18 = arith.maximumf %16, %17 : vector<8x128xf32>
      %19 = arith.truncf %18 : vector<8x128xf32> to vector<8x128xbf16>
      %c0_12 = arith.constant 0 : index
      %c0_13 = arith.constant 0 : index
      %20 = vector.load %arg5[%c0_12, %c0_13] : memref<128x128xbf16, #tpu.memory_space<vmem>>, vector<128x128xbf16>
      %cst_14 = arith.constant dense<0.000000e+00> : vector<8x128xf32>
      %21 = tpu.matmul %19, %20, %cst_14 {dimension_numbers = #tpu.dot_dimension_numbers<[1], [0], [0], [1], [0, 0, 1, 1], [], []>} : vector<8x128xbf16>, vector<128x128xbf16>, vector<8x128xf32> -> vector<8x128xf32>
      %c0_15 = arith.constant 0 : index
      %c0_16 = arith.constant 0 : index
      %22 = vector.load %arg6[%c0_15, %c0_16] : memref<1x128xf32, #tpu.memory_space<vmem>>, vector<1x128xf32>
      %23 = vector.broadcast %22 : vector<1x128xf32> to vector<8x128xf32>
      %24 = arith.addf %21, %23 : vector<8x128xf32>
      %cst_17 = arith.constant 0.000000e+00 : f32
      %25 = vector.broadcast %cst_17 : f32 to vector<8x128xf32>
      %26 = arith.maximumf %24, %25 : vector<8x128xf32>
      %27 = arith.truncf %26 : vector<8x128xf32> to vector<8x128xbf16>
      %c0_18 = arith.constant 0 : index
      %c0_19 = arith.constant 0 : index
      %28 = vector.load %arg7[%c0_18, %c0_19] : memref<128x256xbf16, #tpu.memory_space<vmem>>, vector<128x256xbf16>
      %cst_20 = arith.constant dense<0.000000e+00> : vector<8x256xf32>
      %29 = tpu.matmul %27, %28, %cst_20 {dimension_numbers = #tpu.dot_dimension_numbers<[1], [0], [0], [1], [0, 0, 1, 1], [], []>} : vector<8x128xbf16>, vector<128x256xbf16>, vector<8x256xf32> -> vector<8x256xf32>
      %c0_21 = arith.constant 0 : index
      %c0_22 = arith.constant 0 : index
      %30 = vector.load %arg8[%c0_21, %c0_22] : memref<1x256xf32, #tpu.memory_space<vmem>>, vector<1x256xf32>
      %31 = vector.broadcast %30 : vector<1x256xf32> to vector<8x256xf32>
      %32 = arith.addf %29, %31 : vector<8x256xf32>
      %c0_23 = arith.constant 0 : index
      %c0_24 = arith.constant 0 : index
      %33 = vector.load %arg9[%c0_23, %c0_24] : memref<8x256xf32, #tpu.memory_space<vmem>>, vector<8x256xf32>
      tpu.vector_store %arg9[%c0_23, %c0_24], %32 {strides = array<i32>} : memref<8x256xf32, #tpu.memory_space<vmem>>, vector<8x256xf32>,
    } else {
    }
    return
  }
  func.func @transform_0(%arg0: i32, %arg1: i32) -> (i32, i32) {
    %c0_i32 = arith.constant 0 : i32
    return %arg0, %arg1 : i32, i32
  }
  func.func @transform_1(%arg0: i32, %arg1: i32) -> (i32, i32) {
    %c0_i32 = arith.constant 0 : i32
    %c0_i32_0 = arith.constant 0 : i32
    return %arg1, %c0_i32 : i32, i32
  }
  func.func @transform_2(%arg0: i32, %arg1: i32) -> (i32, i32) {
    %c0_i32 = arith.constant 0 : i32
    %c0_i32_0 = arith.constant 0 : i32
    %c0_i32_1 = arith.constant 0 : i32
    return %c0_i32, %c0_i32_0 : i32, i32
  }
  func.func @transform_3(%arg0: i32, %arg1: i32) -> (i32, i32) {
    %c0_i32 = arith.constant 0 : i32
    %c0_i32_0 = arith.constant 0 : i32
    %c0_i32_1 = arith.constant 0 : i32
    return %c0_i32, %c0_i32_0 : i32, i32
  }
  func.func @transform_4(%arg0: i32, %arg1: i32) -> (i32, i32) {
    %c0_i32 = arith.constant 0 : i32
    %c0_i32_0 = arith.constant 0 : i32
    %c0_i32_1 = arith.constant 0 : i32
    return %c0_i32, %c0_i32_0 : i32, i32
  }
  func.func @transform_5(%arg0: i32, %arg1: i32) -> (i32, i32) {
    %c0_i32 = arith.constant 0 : i32
    %c0_i32_0 = arith.constant 0 : i32
    %c0_i32_1 = arith.constant 0 : i32
    return %c0_i32, %c0_i32_0 : i32, i32
  }
  func.func @transform_6(%arg0: i32, %arg1: i32) -> (i32, i32) {
    %c0_i32 = arith.constant 0 : i32
    %c0_i32_0 = arith.constant 0 : i32
    %c0_i32_1 = arith.constant 0 : i32
    return %c0_i32, %c0_i32_0 : i32, i32
  }
  func.func @transform_7(%arg0: i32, %arg1: i32) -> (i32, i32) {
    %c0_i32 = arith.constant 0 : i32
    %c0_i32_0 = arith.constant 0 : i32
    return %arg0, %c0_i32 : i32, i32
  }
}

</mosaic_0001>

<bundles_post_ra>
// kernel: tpu_custom_call.1
= control target key start
LH: loop header
LB: loop body
LE: loop exit
PB: predicated region body
PF: predicated region fallthrough
CT: control target
= control target key end

     0   :  { %s1900_s0 = inlined_call_operand.hbm [shape: f32[16,512], index: 0, kind: input, shape index: {}]   ;;  %s1901_s1 = inlined_call_operand.hbm [shape: bf16[512,128], index: 1, kind: input, shape index: {}]   ;;  %s1902_s2 = inlined_call_operand.vmem [shape: f32[1,128], index: 2, kind: input, shape index: {}]   ;;  %s1903_s3 = inlined_call_operand.hbm [shape: bf16[128,128], index: 3, kind: input, shape index: {}]   ;;  %s1904_s4 = inlined_call_operand.vmem [shape: f32[1,128], index: 4, kind: input, shape index: {}]   ;;  %s1905_s5 = inlined_call_operand.hbm [shape: bf16[128,256], index: 5, kind: input, shape index: {}]   ;;  %s1906_s6 = inlined_call_operand.vmem [shape: f32[1,256], index: 6, kind: input, shape index: {}]   ;;  %s1907_s7 = inlined_call_operand.hbm [shape: f32[16,256], index: 7, kind: output, shape index: {}]  }
   0x1   :  { %1923 = sst [smem:[#allocation28_spill]] %s1900_s0 }
   0x2   :  { %1924 = sst [smem:[#allocation29_spill]] %s1902_s2 }
   0x3   :  { %1925 = sst [smem:[#allocation30_spill]] %s1903_s3 }
   0x4   :  { %1926 = sst [smem:[#allocation31_spill]] %s1904_s4 }
   0x5   :  { %1927 = sst [smem:[#allocation32_spill]] %s1905_s5 }
   0x6   :  { %1928 = sst [smem:[#allocation33_spill]] %s1906_s6 }
   0x7   :  { %1929 = sst [smem:[#allocation34_spill]] %s1907_s7 }
   0x8   :  { %12 = vsyncpa [#allocation4], 0 }
   0x9   :  { %14 = vsyncpa [#allocation4 + $0x1], 0 }
   0xa   :  { %15 = vsyncpa [#allocation7], 0 }
   0xb   :  { %17 = vsyncpa [#allocation7 + $0x1], 0 }
   0xc   :  { %18 = vsyncpa [#allocation10], 0 }
   0xd   :  { %19 = vsyncpa [#allocation5], 0 }
   0xe   :  { %21 = vsyncpa [#allocation5 + $0x1], 0  ;;  %s1559_s24 = smov 0   ;;  %s1561_s25 = smov 0  }
   0xf   :  { %s1563_s26 = smov 0   ;;  %s1565_s27 = smov 0  }
  0x10   :  { %s1567_s28 = smov 0   ;;  %s1569_s29 = smov 0  }
  0x11   :  { %s1571_s30 = smov 0   ;;  %s1573_s8 = smov 0  }
  0x12   :  { %s1575_s9 = smov 0   ;;  %s1577_s10 = smov 0  }
  0x13   :  { %s1579_s11 = smov 0   ;;  %s1581_s12 = smov 0  }
  0x14   :  { %s1583_s13 = smov 0   ;;  %s1585_s14 = smov 0  }
  0x15 LB: > { %1930 = sst [smem:[#allocation17_spill]] %s1451_s24  ;;  %s1628_s15 = sadd.s32 4294967295, %s1503_s14   ;;  %s1503_s14 = sphi %s1585_s14, %s27_s14   ;;  %s1499_s13 = sphi %s1583_s13, %s1991_s13   ;;  %s1495_s12 = sphi %s1581_s12, %s1990_s12   ;;  %s1491_s11 = sphi %s1579_s11, %s1979_s11   ;;  %s1487_s10 = sphi %s1577_s10, %s1989_s10   ;;  %s1483_s9 = sphi %s1575_s9, %s1978_s9   ;;  %s1479_s8 = sphi %s1573_s8, %s1988_s8   ;;  %s1475_s30 = sphi %s1571_s30, %s1987_s30   ;;  %s1471_s29 = sphi %s1569_s29, %s1986_s29   ;;  %s1467_s28 = sphi %s1567_s28, %s1985_s28   ;;  %s1463_s27 = sphi %s1565_s27, %s1984_s27   ;;  %s1459_s26 = sphi %s1563_s26, %s1983_s26   ;;  %s1455_s25 = sphi %s1561_s25, %s1982_s25   ;;  %s1451_s24 = sphi %s1559_s24, %s1976_s24  }
  0x16   : > { %1931 = sst [smem:[#allocation18_spill]] %s1455_s25  ;;  %s919_s16 = sadd.s32 4294967294, %s1503_s14  }
  0x17   : > { %1932 = sst [smem:[#allocation19_spill]] %s1483_s9  ;;  %p1919_p0 = scmp.eq.s32.totalorder %s1628_s15, 0 }
  0x18   : > { %1933 = sst [smem:[#allocation20_spill]] %s1487_s10  ;;  %p87_p1 = scmp.ne.s32.totalorder %s1467_s28, %s1463_s27 }
  0x19   : > { %1934 = sst [smem:[#allocation21_spill]] %s1491_s11  ;;  %p215_p2 = scmp.ne.s32.totalorder %s1459_s26, %s1455_s25 }
  0x1a   : > { %1935 = sst [smem:[#allocation22_spill]] %s1499_s13  ;;  %p216_p3 = scmp.eq.s32.totalorder %s1628_s15, 7 }
  0x1b   : > { %p1638_p4 = por %p87_p1, %p1919_p0  ;;  %p221_p5 = scmp.ne.s32.totalorder %s1455_s25, %s1451_s24 }
  0x1c   : > { %p1644_p6 = por %p216_p3, %p215_p2  ;;  %p222_p7 = scmp.eq.s32.totalorder %s919_s16, 7 }
  0x1d   : > { %p920_p8 = scmp.ge.s32.totalorder %s1503_s14, 1  ;;  %p229_p9 = scmp.lt.s32.totalorder %s1503_s14, 9 }
  0x1e   : > { %s1937_s18 = scalar_select %p1644_p6, 1, 0 }
  0x1f   : > { %p1650_p10 = por %p222_p7, %p221_p5  ;;  %p1654_p11 = pnand %p920_p8, %p229_p9 }
  0x20   : > { %1938 = sst [smem:[#allocation23_spill]] %s1937_s18  ;;  %s1505_s21 = smov [#allocation8]  }
  0x21   : > { %s1939_s19 = scalar_select %p1650_p10, 1, 0 }
  0x22   : > { %s244_s22 = sshll.u32 %s1505_s21, 4  ;;  %p1052_p12 = pneg %p1654_p11  ;;  %s245_s22 = int_to_ptr.vmem [resolvable:$true] %s244_s22 }
  0x23   : > { %1940 = sst [smem:[#allocation24_spill]] %s1939_s19  ;;  %s1506_s27 = smov [#allocation9]  }
  0x24   : > { %p1662_p13 = pnand %p1052_p12, %p1919_p0  ;;  %s260_s16 = sshll.u32 %s1506_s27, 4  ;;  %s261_s16 = int_to_ptr.vmem [resolvable:$true] %s260_s16 }
  0x25   : > { %s1250_s19 = scalar_lea.vmem %s245_s22, 1024  ;;  %p1258_p7 = scmp.lt.s32.totalorder %s245_s22, %s245_s22 }
  0x26   : > { %p1241_p1 = pneg %p1662_p13  ;;  %p1251_p2 = scmp.ne.s32.totalorder %s245_s22, %s1250_s19 }
  0x27   : > { %p1259_p8 = scmp.lt.s32.totalorder %s1250_s19, %s1250_s19 }
  0x28   : > { %p1253_p3 = pnand %p1251_p2, %p1241_p1 }
  0x29   : > { %p1260_p9 = por %p1259_p8, %p1258_p7 }
  0x2a   : > { %p1254_p5 = pneg %p1253_p3 }
  0x2c   : > { %p1261_p12 = pnand %p1260_p9, %p1254_p5 }
  0x2e   : > { %1264 = shalt.err (!%p1261_p12)
}
  0x2f   : > { %s1913_s21 = smov 64   ;;  %s1914_s24 = smov 4  }
  0x30   : > { %s1943_s3 = sld [smem:[#allocation30_spill]]  ;;  %s1276_s18 = scalar_lea.vmem %s261_s16, 2048 }
  0x31   : > { %p1277_p2 = scmp.ne.s32.totalorder %s261_s16, %s1276_s18  ;;  %p1284_p5 = scmp.lt.s32.totalorder %s261_s16, %s261_s16 }
  0x32   : > { %p1285_p8 = scmp.lt.s32.totalorder %s1276_s18, %s1276_s18 }
  0x33   : > { %p1279_p3 = pnand %p1277_p2, %p1241_p1 }
  0x34   : > { %p1286_p9 = por %p1285_p8, %p1284_p5 }
  0x35   : > { %p1280_p7 = pneg %p1279_p3 }
  0x36   : > { %1055 = dma.hbm_to_vmem [thread:$0]  (!%p1662_p13), %s1943_s3, 1024, %s245_s22, [#allocation7], %s1913_s21, %s1913_s21, %s1914_s24  }
  0x37   : > { %p1287_p12 = pnand %p1286_p9, %p1280_p7 }
  0x39   : > { %1290 = shalt.err (!%p1287_p12)
}
  0x3a   : > { %s1509_s19 = smov 128   ;;  %s1510_s7 = smov 8  }
  0x3b   : > { %s1944_s5 = sld [smem:[#allocation32_spill]]  ;;  %s36_s27 = sadd.s32 1, %s1495_s12 }
  0x3c   : > { %p37_p1 = scmp.ge.s32.totalorder %s36_s27, 4  ;;  %s39_s21 = sadd.s32 1, %s1499_s13 }
  0x3d   : > { %s48_s24 = sadd.s32 1, %s1483_s9  ;;  %p55_p2 = scmp.ne.s32.totalorder %s1483_s9, %s1479_s8 }
  0x3e   : > { %s1993_s27 = smov (%p37_p1, %s36_s27), 0  ;;  %s1995_s21 = smov (!%p37_p1, %s39_s21), %s1499_s13 }
  0x3f   : > { %1945 = sst [smem:[#allocation25_spill]] %s1993_s27  ;;  %s44_s23 = ssub.s32 %s1495_s12, %s1993_s27 }
  0x40   : > { %p56_p3 = scmp.eq.s32.totalorder %s1503_s14, 0  ;;  %p61_p7 = scmp.ne.s32.totalorder %s1479_s8, %s1475_s30 }
  0x41   : > { %1058 = dma.hbm_to_vmem [thread:$0]  (!%p1662_p13), %s1944_s5, 2048, %s261_s16, [#allocation10], %s1509_s19, %s1509_s19, %s1510_s7  }
  0x42   : > { %p41_p13 = scmp.ge.s32.totalorder %s1995_s21, 2  ;;  %p1702_p5 = por %p56_p3, %p55_p2 }
  0x43   : > { %p72_p8 = scmp.eq.s32.totalorder %s44_s23, 0  ;;  %p1710_p9 = por %p1919_p0, %p61_p7 }
  0x44   : > { %s1997_s21 = smov (%p41_p13, %s1995_s21), 0  ;;  %s74_s7 = sadd.s32 1, %s1471_s29 }
  0x45   : > { %1947 = sst [smem:[#allocation26_spill]] %s1997_s21  ;;  %s43_s30 = ssub.s32 %s1499_s13, %s1997_s21 }
  0x46   : > { %p81_p12 = scmp.ne.s32.totalorder %s1471_s29, %s1467_s28  ;;  %s45_s22 = sor.u32 %s44_s23, %s43_s30 }
  0x47   : > { %p203_p1 = scmp.eq.s32.totalorder %s43_s30, 0  ;;  %p46_p2 = scmp.eq.s32.totalorder %s45_s22, 0 }
  0x48   : > { %p1721_p10 = por %p81_p12, %p56_p3  ;;  %s205_s27 = sadd.s32 1, %s1459_s26 }
  0x49   : > { %s1726_s3 = scalar_select %p72_p8, %s1471_s29, %s74_s7  }
  0x4a   : > { %s1729_s5 = scalar_select %p46_p2, %s1483_s9, %s48_s24  }
  0x4b   : > { %p1072_p13 = scmp.lt.s32.totalorder %s1503_s14, 8  ;;  %s277_s23 = sand.u32 1, %s1483_s9  }
  0x4c   : > { %1950 = sst [smem:[#allocation27_spill]] %s1729_s5  ;;  %s925_s30 = sshll.u32 %s1499_s13, 2 }
  0x4d   : > { %s1734_s21 = scalar_select %p203_p1, %s1459_s26, %s205_s27  }
  0x4e   : > { %s924_s22 = sshll.u32 %s277_s23, 3  ;;  %s286_s11 = sadd.s32 %s1495_s12, %s925_s30 }
  0x4f   : > { %s926_s6 = sshll.u32 %s286_s11, 7  ;;  %s281_s4 = scalar_lea.vmem [#allocation3], %s924_s22 }
  0x50   : > { %s290_s2 = sshll.u32 %s281_s4, 4  ;;  %s1951_s0 = sld [smem:[#allocation28_spill]]  ;;  %s291_s2 = int_to_ptr.vmem [resolvable:$true] %s290_s2 }
  0x51   : > { %p1744_p3 = pnand %p1072_p13, %p1702_p5  ;;  %p1750_p7 = pnand %p1072_p13, %p1721_p10 }
  0x52   : > { %s297_s30 = sand.u32 1, %s1503_s14   ;;  %s299_s11 = sand.u32 1, %s1471_s29  }
  0x53   : > { %s278_s22 = scalar_lea.sflag [#allocation4], %s277_s23  ;;  %p1293_p8 = pneg %p1744_p3 }
  0x54   : > { %s1304_s4 = scalar_lea.vmem %s291_s2, 128 }
  0x55   : > { %p1305_p12 = scmp.ne.s32.totalorder %s291_s2, %s1304_s4 }
  0x56   : > { %s288_s7 = scalar_lea.hbm %s1951_s0, %s926_s6  ;;  %s1511_s6 = smov [#allocation3]  }
  0x57   : > { %p1307_p1 = pnand %p1305_p12, %p1293_p8  ;;  %s1309_s25 = sshll.u32 %s1511_s6, 4  ;;  %s1310_s25 = int_to_ptr.vmem [resolvable:$false] %s1309_s25 }
  0x58   : > { %s1311_s10 = scalar_lea.vmem %s1310_s25, 256  ;;  %p1312_p5 = scmp.lt.s32.totalorder %s291_s2, %s1310_s25 }
  0x59   : > { %p1308_p2 = pneg %p1307_p1  ;;  %p1313_p0 = scmp.lt.s32.totalorder %s1311_s10, %s1304_s4 }
  0x5b   : > { %p1314_p6 = por %p1313_p0, %p1312_p5 }
  0x5d   : > { %p1315_p10 = pnand %p1314_p6, %p1308_p2 }
  0x5f   : > { %1318 = shalt.err (!%p1315_p10)
}
  0x60   : > { %1062 = dma.hbm_to_vmem [thread:$0]  (!%p1744_p3), %s288_s7, 128, %s291_s2, %s278_s22  }
  0x61   : > { %s927_s16 = sshll.u32 %s299_s11, 6  ;;  %s978_s18 = sshll.u32 %s1495_s12, 10 }
  0x62   : > { %s307_s13 = scalar_lea.hbm %s1901_s1, %s978_s18  ;;  %s301_s5 = scalar_lea.vmem [#allocation6], %s927_s16 }
  0x63   : > { %s308_s6 = sshll.u32 %s301_s5, 4  ;;  %s298_s9 = scalar_lea.sflag [#allocation7], %s297_s30  ;;  %s309_s6 = int_to_ptr.vmem [resolvable:$true] %s308_s6 }
  0x64   : > { %p1321_p13 = pneg %p1750_p7  ;;  %s1332_s4 = scalar_lea.vmem %s309_s6, 1024 }
  0x65   : > { %p1333_p0 = scmp.ne.s32.totalorder %s309_s6, %s1332_s4  ;;  %s1512_s24 = smov [#allocation6]  }
  0x66   : > { %s1337_s25 = sshll.u32 %s1512_s24, 4  ;;  %s1338_s25 = int_to_ptr.vmem [resolvable:$false] %s1337_s25 }
  0x67   : > { %p1335_p6 = pnand %p1333_p0, %p1321_p13  ;;  %s1339_s2 = scalar_lea.vmem %s1338_s25, 2048 }
  0x68   : > { %p1340_p3 = scmp.lt.s32.totalorder %s309_s6, %s1338_s25  ;;  %p1341_p12 = scmp.lt.s32.totalorder %s1339_s2, %s1332_s4 }
  0x69   : > { %p1336_p8 = pneg %p1335_p6 }
  0x6a   : > { %p1342_p1 = por %p1341_p12, %p1340_p3 }
  0x6c   : > { %p1343_p2 = pnand %p1342_p1, %p1336_p8 }
  0x6e   : > { %1346 = shalt.err (!%p1343_p2)
}
  0x6f   : > { %s1954_s0 = smov 4   ;;  %s1955_s5 = smov 64  }
  0x70   : > { %1065 = dma.hbm_to_vmem [thread:$0]  (!%p1750_p7), %s307_s13, 1024, %s309_s6, %s298_s9, %s1955_s5, %s1955_s5, %s1954_s0  }
  0x71   : > { %320 = sbr.rel (%p1654_p11) target bundleno = 851 (0x353), region = 48  ;;  %s322_s7 = sand.u32 (!%p1654_p11), 1, %s1479_s8  }
  0x72   : > { %s1774_s30 = sshll.u32 (!%p1654_p11), %s322_s7, 3  ;;  %s323_s11 = scalar_lea.sflag (!%p1654_p11), [#allocation4], %s322_s7 }
  0x73   : > { %s326_s22 = scalar_lea.vmem (!%p1654_p11), [#allocation3], %s1774_s30 }
  0x76   : > { %1430 = dma.done.wait (%p1710_p9), %s323_s11, 128  }
  0x77   : > { %1432 = vsyncadd (%p1710_p9), %s323_s11, 4294967168  ;;  %s331_s9 = sand.u32 1, %s1628_s15   ;;  %s333_s13 = sand.u32 1, %s1467_s28  }
  0x78   : > { %s932_s20 = sshll.u32 %s333_s13, 6  ;;  %s332_s27 = scalar_lea.sflag [#allocation7], %s331_s9 }
  0x79   : > { %s1783_s10 = scalar_lea.vmem [#allocation6], %s932_s20 }
  0x7a   : > { %1434 = dma.done.wait (%p1638_p4), %s332_s27, 1024  }
  0x7b   : > { %1436 = vsyncadd (%p1638_p4), %s332_s27, 4294966272  ;;  %p1956_p11 = scmp.eq.s32.totalorder %s1628_s15, 0 }
  0x7d   : > { %1438 = dma.done.wait (%p1956_p11), [#allocation7], 1024   ;;  %p1957_p7 = pmov %p1956_p11 }
  0x7f   : > { %1440 = vsyncadd (%p1957_p7), [#allocation7], 4294966272  ;;  %p1958_p9 = pmov %p1957_p7 }
  0x80   : > { %p1959_p5 = pmov %p1957_p7 }
  0x81   : > { %1442 = dma.done.wait (%p1958_p9), [#allocation10], 2048  }
  0x82   : > { %1444 = vsyncadd (%p1959_p5), [#allocation10], 4294965248  ;;  %s1960_s19 = sld [smem:[#allocation18_spill]]  ;;  %v1513_v0 = vmov 0.0   ;;  %vm1514_vm0 = vmmov 0   ;;  %v1199_v1 = vld [vmem:[%s1783_s10 + $0x38] sm:$0xff]  }
  0x83   : > { %998 = vmatprep.subr.bf16.mxu0 %v1513_v0  ;;  %1014 = vmatprep.mubr.msk.bf16.mxu0 %vm1514_vm0, %v1513_v0  ;;  %v1200_v2 = vld [vmem:[%s1783_s10 + $0x30] sm:$0xff]   ;;  %v1201_v3 = vld [vmem:[%s1783_s10 + $0x28] sm:$0xff]   ;;  %v1202_v4 = vld [vmem:[%s1783_s10 + $0x20] sm:$0xff]   ;;  %s1961_s18 = sld [smem:[#allocation20_spill]] }
  0x84   : > { %999 = vmatpush3.bf16.msra.mxu0 %v1199_v1  ;;  %v1203_v5 = vld [vmem:[%s1783_s10 + $0x18] sm:$0xff]   ;;  %v1204_v6 = vld [vmem:[%s1783_s10 + $0x10] sm:$0xff]   ;;  %v1205_v7 = vld [vmem:[%s1783_s10 + $0x8] sm:$0xff]  }
  0x85   : > { %1000 = vmatprep.subr.bf16.mxu0 %v1513_v0  ;;  %v1206_v8 = vld [vmem:[%s1783_s10] sm:$0xff]   ;;  %v381_v9 = vld [vmem:[%s326_s22] sm:$0xff] }
  0x86   : > { %v382_v10 = vpack.c.bf16 %v381_v9, %v381_v9 }
  0x88   : > { %s376_s17 = sand.u32 1, %s1960_s19   ;;  %1001 = vmatpush3.bf16.msra.mxu0 %v1200_v2 }
  0x89   : > { %s1800_s16 = sshll.u32 %s376_s17, 4  ;;  %1002 = vmatprep.subr.bf16.mxu0 %v1513_v0  ;;  %p944_p4 = scmp.ne.s32.totalorder %s1961_s18, 0 }
  0x8a   : > { %s1813_s15 = scalar_lea.vmem [#allocation11], %s1800_s16 }
  0x8c   : > { %1003 = vmatpush3.bf16.msra.mxu0 %v1201_v3 }
  0x8d   : > { %1004 = vmatprep.subr.bf16.mxu0 %v1513_v0 }
  0x90   : > { %1005 = vmatpush3.bf16.msra.mxu0 %v1202_v4 }
  0x91   : > { %1006 = vmatprep.subr.bf16.mxu0 %v1513_v0 }
  0x94   : > { %1007 = vmatpush3.bf16.msra.mxu0 %v1203_v5 }
  0x95   : > { %1008 = vmatprep.subr.bf16.mxu0 %v1513_v0 }
  0x98   : > { %1009 = vmatpush3.bf16.msra.mxu0 %v1204_v6 }
  0x99   : > { %1010 = vmatprep.subr.bf16.mxu0 %v1513_v0 }
  0x9c   : > { %1011 = vmatpush3.bf16.msra.mxu0 %v1205_v7 }
  0x9d   : > { %1012 = vmatprep.subr.bf16.mxu0 %v1513_v0 }
  0xa0   : > { %1013 = vmatpush3.bf16.msra.mxu0 %v1206_v8 }
  0xa3   : > { %1015 = vmatmul.mubr.bf16.vlgmr.msra.gmra.mxu0 %v382_v10 }
 0x163   : > { %v481_v11 = vpop.f32.mrf.mxu0 }
 0x165   : > { %v1016_v12 = vpop.f32.mrf.mxu0  ;;  %490 = sbr.rel (%p944_p4) target bundleno = 363 (0x16b), region = 68 }
 0x167   : > { %v484_v13 = vpop.f32.mrf.mxu0 }
 0x169   : > { %v1017_v14 = vpop.f32.mrf.mxu0 }
 0x16a   : > { %491 = vst [vmem:[#allocation2] sm:$0xff] %v481_v11 }
 0x16b PF: > { %s1962_s23 = sld [smem:[#allocation20_spill]] }
 0x171   : > { %p945_p10 = scmp.le.s32.totalorder %s1962_s23, 0 }
 0x173   : > { %495 = sbr.rel (%p945_p10) target bundleno = 380 (0x17c), region = 72 }
 0x178   : > { %v496_v15 = vld [vmem:[#allocation2] sm:$0xff] }
 0x179   : > { %v497_v16 = vadd.f32 %v496_v15, %v481_v11 }
 0x17b   : > { %498 = vst [vmem:[#allocation2] sm:$0xff] %v497_v16 }
 0x17c PF: > { %s1963_s6 = sld [smem:[#allocation20_spill]] }
 0x182   : > { %p946_p13 = scmp.ne.s32.totalorder %s1963_s6, 3 }
 0x183   : > { %s1964_s25 = sld [smem:[#allocation29_spill]] (!%p946_p13) }
 0x184   : > { %502 = sbr.rel (%p946_p13) target bundleno = 824 (0x338), region = 76  ;;  %s1965_s5 = sld [smem:[#allocation31_spill]] (!%p946_p13) }
 0x185   : > { %s1966_s11 = sld [smem:[#allocation33_spill]] (!%p946_p13) }
 0x189   : > { %v1207_v17 = vld [vmem:[#allocation8 + $0x38] sm:$0xff]   ;;  %v1515_v18 = vmov 0.0   ;;  %v1208_v19 = vld [vmem:[#allocation8 + $0x30] sm:$0xff]   ;;  %vm1516_vm1 = vmmov 0   ;;  %v1209_v20 = vld [vmem:[#allocation8 + $0x28] sm:$0xff]   ;;  %v1517_v47 = vmov 0   ;;  %v645_v56 = vlaneseq }
 0x18a   : > { %1018 = vmatprep.subr.bf16.mxu0 %v1515_v18  ;;  %1034 = vmatprep.mubr.msk.bf16.mxu0 %vm1516_vm1, %v1515_v18  ;;  %v1210_v21 = vld [vmem:[#allocation8 + $0x20] sm:$0xff]   ;;  %v1215_v22 = vld [vmem:[#allocation9 + $0x74] ss:$8 sps:$4 sm:$0xff]   ;;  %v1217_v23 = vld [vmem:[#allocation9 + $0x70] ss:$8 sps:$4 sm:$0xff]  }
 0x18b   : > { %1019 = vmatpush3.bf16.msra.mxu0 %v1207_v17  ;;  %v1218_v24 = vld [vmem:[#allocation9 + $0x64] ss:$8 sps:$4 sm:$0xff]   ;;  %735 = vmatprep.subr.bf16.mxu1 %v1215_v22  ;;  %v1220_v25 = vld [vmem:[#allocation9 + $0x60] ss:$8 sps:$4 sm:$0xff]   ;;  %v1221_v26 = vld [vmem:[#allocation9 + $0x54] ss:$8 sps:$4 sm:$0xff]  }
 0x18c   : > { %1020 = vmatprep.subr.bf16.mxu0 %v1515_v18  ;;  %736 = vmatpush1.bf16.msra.mxu1 %v1217_v23  ;;  %v1211_v27 = vld [vmem:[#allocation8 + $0x18] sm:$0xff]   ;;  %v1212_v28 = vld [vmem:[#allocation8 + $0x10] sm:$0xff]   ;;  %v503_v30 = vld [vmem:[#allocation2] sm:$0xff]  ;;  %v646_v57 = vshrl.u32 %v645_v56, 7 }
 0x18d   : > { %737 = vmatprep.subr.bf16.mxu1 %v1218_v24  ;;  %v1223_v29 = vld [vmem:[#allocation9 + $0x50] ss:$8 sps:$4 sm:$0xff]   ;;  %v1224_v31 = vld [vmem:[#allocation9 + $0x44] ss:$8 sps:$4 sm:$0xff]   ;;  %v947_v32 = vld [vmem:[%s1964_s25] ss:$0 sm:$0xff]  ;;  %767 = vmatprep.mubr.bf16.mxu1 %v1517_v47 }
 0x18e   : > { %v1226_v33 = vld [vmem:[#allocation9 + $0x40] ss:$8 sps:$4 sm:$0xff]   ;;  %v511_v34 = vadd.f32 %v947_v32, %v503_v30  ;;  %v1227_v35 = vld [vmem:[#allocation9 + $0x34] ss:$8 sps:$4 sm:$0xff]   ;;  %v1229_v37 = vld [vmem:[#allocation9 + $0x30] ss:$8 sps:$4 sm:$0xff]  }
 0x18f   : > { %1021 = vmatpush3.bf16.msra.mxu0 %v1208_v19  ;;  %v1213_v36 = vld [vmem:[#allocation8 + $0x8] sm:$0xff]   ;;  %v1214_v40 = vld [vmem:[#allocation8] sm:$0xff]   ;;  %v1233_v43 = vld [vmem:[#allocation9 + $0x14] ss:$8 sps:$4 sm:$0xff]   ;;  %v647_v58 = vsub.s32 0, %v646_v57  ;;  %v651_v60 = vsub.s32 1, %v646_v57 }
 0x190   : > { %1022 = vmatprep.subr.bf16.mxu0 %v1515_v18  ;;  %738 = vmatpush1.bf16.msra.mxu1 %v1220_v25  ;;  %v512_v38 = vmax.f32 %v511_v34, 0.0  ;;  %v1230_v39 = vld [vmem:[#allocation9 + $0x24] ss:$8 sps:$4 sm:$0xff]   ;;  %v1232_v41 = vld [vmem:[#allocation9 + $0x20] ss:$8 sps:$4 sm:$0xff]  }
 0x191   : > { %739 = vmatprep.subr.bf16.mxu1 %v1221_v26  ;;  %v1235_v44 = vld [vmem:[#allocation9 + $0x10] ss:$8 sps:$4 sm:$0xff]   ;;  %v1236_v45 = vld [vmem:[#allocation9 + $0x4] ss:$8 sps:$4 sm:$0xff]   ;;  %v1238_v46 = vld [vmem:[#allocation9] ss:$8 sps:$4 sm:$0xff]  }
 0x192   : > { %v513_v42 = vpack.c.bf16 %v512_v38, %v512_v38  ;;  %v948_v48 = vld [vmem:[%s1965_s5] ss:$0 sm:$0xff] }
 0x193   : > { %1023 = vmatpush3.bf16.msra.mxu0 %v1209_v20  ;;  %v643_v59 = vld [vmem:[%s1966_s11] sm:$0x3] }
 0x194   : > { %1024 = vmatprep.subr.bf16.mxu0 %v1515_v18  ;;  %740 = vmatpush1.bf16.msra.mxu1 %v1223_v29  ;;  %v648_v61 = vrot.slane %v643_v59, %v647_v58  ;;  %v652_v62 = vrot.slane %v643_v59, %v651_v60 }
 0x195   : > { %741 = vmatprep.subr.bf16.mxu1 %v1224_v31 }
 0x197   : > { %1025 = vmatpush3.bf16.msra.mxu0 %v1210_v21 }
 0x198   : > { %1026 = vmatprep.subr.bf16.mxu0 %v1515_v18  ;;  %742 = vmatpush1.bf16.msra.mxu1 %v1226_v33 }
 0x199   : > { %743 = vmatprep.subr.bf16.mxu1 %v1227_v35 }
 0x19b   : > { %1027 = vmatpush3.bf16.msra.mxu0 %v1211_v27 }
 0x19c   : > { %1028 = vmatprep.subr.bf16.mxu0 %v1515_v18  ;;  %744 = vmatpush1.bf16.msra.mxu1 %v1229_v37 }
 0x19d   : > { %745 = vmatprep.subr.bf16.mxu1 %v1230_v39 }
 0x19f   : > { %1029 = vmatpush3.bf16.msra.mxu0 %v1212_v28 }
 0x1a0   : > { %1030 = vmatprep.subr.bf16.mxu0 %v1515_v18  ;;  %746 = vmatpush1.bf16.msra.mxu1 %v1232_v41 }
 0x1a1   : > { %747 = vmatprep.subr.bf16.mxu1 %v1233_v43 }
 0x1a3   : > { %1031 = vmatpush3.bf16.msra.mxu0 %v1213_v36 }
 0x1a4   : > { %1032 = vmatprep.subr.bf16.mxu0 %v1515_v18  ;;  %748 = vmatpush1.bf16.msra.mxu1 %v1235_v44 }
 0x1a5   : > { %749 = vmatprep.subr.bf16.mxu1 %v1236_v45 }
 0x1a7   : > { %1033 = vmatpush3.bf16.msra.mxu0 %v1214_v40 }
 0x1a8   : > { %750 = vmatpush1.bf16.msra.mxu1 %v1238_v46 }
 0x1aa   : > { %1035 = vmatmul.mubr.bf16.vlgmr.msra.gmra.mxu0 %v513_v42 }
 0x26a   : > { %v619_v49 = vpop.f32.mrf.mxu0 }
 0x26b   : > { %v620_v50 = vadd.f32 %v948_v48, %v619_v49 }
 0x26c   : > { %v1036_v51 = vpop.f32.mrf.mxu0 }
 0x26d   : > { %v625_v52 = vmax.f32 %v620_v50, 0.0 }
 0x26e   : > { %v622_v53 = vpop.f32.mrf.mxu0 }
 0x26f   : > { %v626_v54 = vpack.c.bf16 %v625_v52, %v625_v52 }
 0x270   : > { %v1037_v55 = vpop.f32.mrf.mxu0 }
 0x271   : > { %768 = vmatmul.mubr.bf16.vlgmr.msra.gmra.mxu1 %v626_v54 }
 0x331   : > { %v769_v63 = vpop.f32.mrf.mxu1 }
 0x332   : > { %v770_v0 = vadd.f32 %v769_v63, %v648_v61 }
 0x333   : > { %v771_v1 = vpop.f32.mrf.mxu1 }
 0x334   : > { %776 = vst [vmem:[%s1813_s15] sm:$0xff] %v770_v0  ;;  %v772_v2 = vadd.f32 %v771_v1, %v652_v62 }
 0x335   : > { %v773_v3 = vpop.f32.mrf.mxu1 }
 0x336   : > { %777 = vst [vmem:[%s1813_s15 + $0x8] sm:$0xff] %v772_v2 }
 0x337   : > { %v774_v4 = vpop.f32.mrf.mxu1 }
 0x338 PF: > { %s1967_s22 = sld [smem:[#allocation21_spill]]  ;;  %s793_s18 = sshll.u32 %s1813_s15, 4  ;;  %s794_s18 = int_to_ptr.vmem [resolvable:$true] %s793_s18 }
 0x339   : > { %s1969_s13 = sld [smem:[#allocation23_spill]]  ;;  %s779_s23 = scalar_lea.sflag [#allocation5], %s376_s17 }
 0x33a   : > { %s1970_s19 = sld [smem:[#allocation34_spill]]  ;;  %s1347_s6 = scalar_lea.vmem %s794_s18, 256 }
 0x33b   : > { %p1348_p0 = scmp.ne.s32.totalorder %s794_s18, %s1347_s6  ;;  %s1518_s4 = smov [#allocation11]  }
 0x33c   : > { %s1351_s24 = sshll.u32 %s1518_s4, 4  ;;  %s1352_s24 = int_to_ptr.vmem [resolvable:$false] %s1351_s24 }
 0x33d   : > { %s1353_s25 = scalar_lea.vmem %s1352_s24, 512  ;;  %p1354_p12 = scmp.lt.s32.totalorder %s794_s18, %s1352_s24 }
 0x33e   : > { %s979_s20 = sshll.u32 %s1967_s22, 8  ;;  %p1355_p1 = scmp.lt.s32.totalorder %s1353_s25, %s1347_s6 }
 0x33f   : > { %p1971_p6 = scmp.ne.s32.totalorder %s1969_s13, 0 }
 0x340   : > { %s791_s16 = scalar_lea.hbm %s1970_s19, %s979_s20  ;;  %p1356_p2 = por %p1355_p1, %p1354_p12 }
 0x341   : > { %p1349_p8 = pnand %p1348_p0, %p1971_p6 }
 0x343   : > { %p1350_p3 = pneg %p1349_p8 }
 0x345   : > { %p1357_p11 = pnand %p1356_p2, %p1350_p3 }
 0x347   : > { %1360 = shalt.err (!%p1357_p11)
}
 0x348   : > { %s1361_s2 = scalar_lea.hbm %s791_s16, 256  ;;  %s1365_s0 = scalar_lea.hbm %s1970_s19, 512 }
 0x349   : > { %p1362_p7 = scmp.ne.s32.totalorder %s791_s16, %s1361_s2  ;;  %p1366_p4 = scmp.lt.s32.totalorder %s791_s16, %s1970_s19 }
 0x34a   : > { %p1367_p10 = scmp.lt.s32.totalorder %s1365_s0, %s1361_s2 }
 0x34b   : > { %p1363_p9 = pnand %p1362_p7, %p1971_p6 }
 0x34c   : > { %p1368_p13 = por %p1367_p10, %p1366_p4 }
 0x34d   : > { %p1364_p5 = pneg %p1363_p9 }
 0x34f   : > { %p1369_p0 = pnand %p1368_p13, %p1364_p5 }
 0x351   : > { %1372 = shalt.err (!%p1369_p0)
}
 0x352   : > { %1050 = dma.vmem_to_hbm [thread:$0]  (%p1971_p6), %s794_s18, 256, %s791_s16, %s779_s23  }
 0x353 PF: > { %s1972_s30 = sld [smem:[#allocation17_spill]]  ;;  %p1075_p8 = scmp.ge.s32.totalorder %s1503_s14, 2 }
 0x354   : > { %s1973_s11 = sld [smem:[#allocation24_spill]] }
 0x359   : > { %s805_s22 = sand.u32 1, %s1972_s30  }
 0x35a   : > { %p1974_p3 = scmp.ne.s32.totalorder %s1973_s11, 0  ;;  %s806_s9 = scalar_lea.sflag [#allocation5], %s805_s22 }
 0x35c   : > { %p1067_p12 = pnand %p1075_p8, %p1974_p3 }
 0x35e   : > { %p1068_p1 = pneg %p1067_p12 }
 0x360   : > { %1446 = dma.done.wait (%p1068_p1), %s806_s9, 256  }
 0x361   : > { %1448 = vsyncadd (%p1068_p1), %s806_s9, 4294967040  ;;  %s27_s14 = sadd.s32 1, %s1503_s14   ;;  %s1976_s24 = sld [smem:[#allocation18_spill]] }
 0x362   : > { %p1853_p2 = scmp.ge.s32.totalorder %s27_s14, 10   ;;  %s1977_s13 = sld [smem:[#allocation19_spill]] }
 0x363   : > { %s1978_s9 = sld [smem:[#allocation27_spill]]  ;;  %s1982_s25 = smov %s1459_s26 }
 0x364   : > { %s1979_s11 = sld [smem:[#allocation22_spill]]  ;;  %s1983_s26 = smov %s1734_s21 }
 0x365   : > { %s1980_s16 = sld [smem:[#allocation25_spill]]  ;;  %s1984_s27 = smov %s1467_s28 }
 0x366   : > { %s1981_s18 = sld [smem:[#allocation26_spill]]  ;;  %s1985_s28 = smov %s1471_s29 }
 0x367   : > { %s1986_s29 = smov %s1726_s3  ;;  %s1987_s30 = smov %s1479_s8 }
 0x368   : > { %s1988_s8 = smov %s1977_s13  ;;  %s1989_s10 = smov %s1495_s12 }
 0x369   :  { %26 = sbr.rel (!%p1853_p2) target bundleno = 21 (0x15), region = 126 }
 0x36b   : > { %s1990_s12 = smov %s1980_s16 }
 0x36c   : > { %s1991_s13 = smov %s1981_s18 }
 0x36e   :  { %811 = vsyncpa [#allocation4], 1 }
 0x36f   :  { %813 = vsyncpa [#allocation4 + $0x1], 1 }
 0x370   :  { %814 = vsyncpa [#allocation7], 1 }
 0x371   :  { %816 = vsyncpa [#allocation7 + $0x1], 1 }
 0x372   :  { %817 = vsyncpa [#allocation10], 1 }
 0x373   :  { %818 = vsyncpa [#allocation5], 1 }
 0x374   :  { %820 = vsyncpa [#allocation5 + $0x1], 1 }

</bundles_post_ra>
